<compile_context>
chip_gen: v7x
topology: tpu7x:2x2x1
jax: 0.10.0
libtpu: 0.0.40
codegen_flags: <defaults>
</compile_context>

<pallas_src>
import functools

import jax
import jax.numpy as jnp
from jax import lax
from jax.experimental import pallas as pl
from jax.experimental.pallas import tpu as pltpu

_LANE = 128


def _round_up(x, m):
    return ((x + m - 1) // m) * m


def _choose_block_b(B, cap=8192):
    """Batch-tile heuristic: big tiles (amortize per-step overhead), even tile
    count >= 2 when the batch allows it (v7x has 2 TensorCores per chip)."""
    tiles = max(1, -(-B // cap))
    if B > 2 * _LANE:
        tiles = max(tiles, 2)
        if tiles % 2:
            tiles += 1
    return _round_up(-(-B // tiles), _LANE)


def _mlp_kernel(x_ref, w1t_ref, b1t_ref, w2t_ref, b2t_ref, w3_ref, b3_ref,
                o_ref, *, task_type):
    """Full MLP for one batch tile, computed with batch mapped to vreg lanes."""
    # Layer 1: contract over F without materializing a transpose of x.
    #   (H1, F) . (block_b, F)^T -> (H1, block_b), f32 accumulation on the MXU.
    h = lax.dot_general(
        w1t_ref[...], x_ref[...],
        dimension_numbers=(((1,), (1,)), ((), ())),
        preferred_element_type=jnp.float32) + b1t_ref[...]
    h = jnp.maximum(h, 0.0)

    # Layer 2: (H2, H1) @ (H1, block_b) -> (H2, block_b).  Activation is cast
    # to the weight dtype (no-op in f32, bf16 MXU path when weights are bf16).
    h = jnp.dot(w2t_ref[...], h.astype(w2t_ref.dtype),
                preferred_element_type=jnp.float32) + b2t_ref[...]
    h = jnp.maximum(h, 0.0)

    # Final Linear(H2 -> 1): VPU broadcast-mul + sublane reduce (XLU) rather
    # than an M=1 matmul; result is a lane-dense (1, block_b) row.  b3 comes
    # from SMEM as a scalar.
    out = jnp.sum(h * w3_ref[...], axis=0, keepdims=True) + b3_ref[0, 0]

    if task_type == 'classification':
        out = jax.nn.sigmoid(out)

    o_ref[0] = out.astype(o_ref.dtype)


def initial_fc_net_forward(x_z, params, task_type='regression', block_b=None):
    """Initial_FC_Net forward as a single Pallas kernel tiled over batch rows.

    params = (W1, b1, W2, b2, W3, b3) with W: (in, out), b: (1, out)
    (i.e. y = x @ W + b, the transpose of PyTorch's nn.Linear.weight).
    x_z is consumed in whatever dtype it arrives in; pass bf16 x (producer
    side) to halve the batch-scaled HBM stream on v6e/v7x.
    """
    w1, b1, w2, b2, w3, b3 = params
    B, F = x_z.shape
    H1 = w1.shape[1]
    H2 = w2.shape[1]
    assert w3.shape[1] == 1, "Initial_FC_Net always has a single output unit"

    if block_b is None:
        block_b = _choose_block_b(B)
    block_b = _round_up(block_b, _LANE)
    num_tiles = pl.cdiv(B, block_b)

    # Transposed-weight layout so every intermediate keeps batch on lanes.
    # Layer-1/2 weights are cast to x's dtype (a few KiB, grid-resident);
    # biases, w3 and the final reduce stay f32.
    w1t = w1.T.astype(x_z.dtype)          # (H1, F)
    b1t = b1.T.astype(jnp.float32)        # (H1, 1)
    w2t = w2.T.astype(x_z.dtype)          # (H2, H1)
    b2t = b2.T.astype(jnp.float32)        # (H2, 1)
    w3c = w3.astype(jnp.float32)          # (H2, 1)
    b3s = b3.reshape(1, 1).astype(jnp.float32)   # SMEM scalar

    kernel = functools.partial(_mlp_kernel, task_type=task_type)

    out_tiles = pl.pallas_call(
        kernel,
        out_shape=jax.ShapeDtypeStruct((num_tiles, 1, block_b), x_z.dtype),
        grid_spec=pltpu.PrefetchScalarGridSpec(
            num_scalar_prefetch=0,
            grid=(num_tiles,),
            in_specs=[
                pl.BlockSpec((block_b, F), lambda i: (i, 0)),   # x batch tile
                pl.BlockSpec((H1, F), lambda i: (0, 0)),        # W1^T (resident)
                pl.BlockSpec((H1, 1), lambda i: (0, 0)),        # b1^T
                pl.BlockSpec((H2, H1), lambda i: (0, 0)),       # W2^T (resident)
                pl.BlockSpec((H2, 1), lambda i: (0, 0)),        # b2^T
                pl.BlockSpec((H2, 1), lambda i: (0, 0)),        # w3 column
                pl.BlockSpec(memory_space=pltpu.MemorySpace.SMEM),  # b3 scalar
            ],
            out_specs=pl.BlockSpec((1, 1, block_b), lambda i: (i, 0, 0)),
        ),
        compiler_params=pltpu.CompilerParams(
            dimension_semantics=("parallel",),
            vmem_limit_bytes=32 * 1024 * 1024),
    )(x_z, w1t, b1t, w2t, b2t, w3c, b3s)

    # (num_tiles, 1, block_b) -> flat -> strip the ragged tail -> (B, 1).
    # Tail lanes of the last tile were computed from unspecified rows and are
    # discarded here; nothing downstream reduces across them.
    return out_tiles.reshape(num_tiles * block_b)[:B].reshape(B, 1)


def init_params(key, in_dim, hidden_units, out_dim=1, dtype=jnp.float32):
    """Deterministic synthetic init (module __init__ only defines shapes)."""
    sizes = [in_dim] + list(hidden_units) + [out_dim]
    params = []
    for i in range(len(sizes) - 1):
        key, kw, kb = jax.random.split(key, 3)
        bound = 1.0 / jnp.sqrt(sizes[i])
        w = jax.random.uniform(kw, (sizes[i], sizes[i + 1]), dtype,
                               minval=-bound, maxval=bound)
        b = jax.random.uniform(kb, (1, sizes[i + 1]), dtype,
                               minval=-bound, maxval=bound)
        params += [w, b]
    return tuple(params)


def _reference_forward(x_z, params, task_type='regression'):
    w1, b1, w2, b2, w3, b3 = params
    h = jnp.maximum(x_z @ w1 + b1, 0.0)
    h = jnp.maximum(h @ w2 + b2, 0.0)
    out = h @ w3 + b3
    if task_type == 'classification':
        out = jax.nn.sigmoid(out)
    return out


if __name__ == "__main__":
    # Shapes consistent with the module: X_num_features=4, Z_num_features=4,
    # hidden_units=[32, 32], output dim 1.
    X_num_features = 4
    Z_num_features = 4
    hidden_units = [32, 32]
    in_dim = X_num_features + Z_num_features

    key = jax.random.PRNGKey(0)
    key, kx = jax.random.split(key)
    params = init_params(key, in_dim, hidden_units, out_dim=1)

    # --- Small batch (single 128-row tile, ragged last block), regression ---
    batch = 16
    x_z = jax.random.normal(kx, (batch, in_dim), dtype=jnp.float32)
    out = jax.block_until_ready(initial_fc_net_forward(x_z, params))
    ref = _reference_forward(x_z, params)
    assert out.shape == (batch, 1)
    assert jnp.allclose(out, ref, atol=1e-5, rtol=1e-5)

    # --- Classification head (sigmoid) ---
    out_c = jax.block_until_ready(
        initial_fc_net_forward(x_z, params, task_type='classification'))
    ref_c = _reference_forward(x_z, params, task_type='classification')
    assert jnp.allclose(out_c, ref_c, atol=1e-5, rtol=1e-5)

    # --- Ragged batch exercising a 2-step grid (megacore-friendly) ---
    key, kx2 = jax.random.split(key)
    x_big = jax.random.normal(kx2, (300, in_dim), dtype=jnp.float32)
    out_big = jax.block_until_ready(initial_fc_net_forward(x_big, params))
    ref_big = _reference_forward(x_big, params)
    assert out_big.shape == (300, 1)
    assert jnp.allclose(out_big, ref_big, atol=1e-5, rtol=1e-5)

    # --- bf16 producer-side input (no wrapper cast; weights follow x dtype) ---
    x_bf16 = x_big.astype(jnp.bfloat16)
    out_bf16 = jax.block_until_ready(initial_fc_net_forward(x_bf16, params))
    assert jnp.allclose(out_bf16.astype(jnp.float32), ref_big,
                        atol=5e-2, rtol=5e-2)

    print("KERNEL_OK")
</pallas_src>

<mosaic_0001>
module attributes {stable_mosaic.version = 11 : i64} {
  func.func @_mlp_kernel(%arg0: i32, %arg1: memref<128x8xf32, #tpu.memory_space<vmem>>, %arg2: memref<32x8xf32, #tpu.memory_space<vmem>>, %arg3: memref<32x1xf32, #tpu.memory_space<vmem>>, %arg4: memref<32x32xf32, #tpu.memory_space<vmem>>, %arg5: memref<32x1xf32, #tpu.memory_space<vmem>>, %arg6: memref<32x1xf32, #tpu.memory_space<vmem>>, %arg7: memref<1x1xf32, #tpu.memory_space<smem>>, %arg8: memref<1x1x128xf32, #tpu.memory_space<vmem>>) attributes {dimension_semantics = [#tpu.dimension_semantics<parallel>], iteration_bounds = array<i64: 1>, scalar_prefetch = 0 : i64, scratch_operands = 0 : i64, tpu.core_type = #tpu.core_type<tc>, window_params = [{transform_indices = @transform_0, window_bounds = array<i64: 128, 8>}, {pipeline_mode = #tpu.pipeline_mode<synchronous>, transform_indices = @transform_1, window_bounds = array<i64: 32, 8>}, {pipeline_mode = #tpu.pipeline_mode<synchronous>, transform_indices = @transform_2, window_bounds = array<i64: 32, 1>}, {pipeline_mode = #tpu.pipeline_mode<synchronous>, transform_indices = @transform_3, window_bounds = array<i64: 32, 32>}, {pipeline_mode = #tpu.pipeline_mode<synchronous>, transform_indices = @transform_4, window_bounds = array<i64: 32, 1>}, {pipeline_mode = #tpu.pipeline_mode<synchronous>, transform_indices = @transform_5, window_bounds = array<i64: 32, 1>}, {transform_indices = @transform_6, window_bounds = array<i64: 1, 1>}, {transform_indices = @transform_7, window_bounds = array<i64: 1, 1, 128>}]} {
    %c0 = arith.constant 0 : index
    %c0_0 = arith.constant 0 : index
    %0 = vector.load %arg2[%c0, %c0_0] : memref<32x8xf32, #tpu.memory_space<vmem>>, vector<32x8xf32>
    %c0_1 = arith.constant 0 : index
    %c0_2 = arith.constant 0 : index
    %1 = vector.load %arg1[%c0_1, %c0_2] : memref<128x8xf32, #tpu.memory_space<vmem>>, vector<128x8xf32>
    %cst = arith.constant dense<0.000000e+00> : vector<32x128xf32>
    %2 = tpu.matmul %0, %1, %cst {dimension_numbers = #tpu.dot_dimension_numbers<[1], [1], [0], [0], [0, 0, 1, 0], [], []>} : vector<32x8xf32>, vector<128x8xf32>, vector<32x128xf32> -> vector<32x128xf32>
    %c0_3 = arith.constant 0 : index
    %c0_4 = arith.constant 0 : index
    %3 = vector.load %arg3[%c0_3, %c0_4] : memref<32x1xf32, #tpu.memory_space<vmem>>, vector<32x1xf32>
    %4 = vector.broadcast %3 : vector<32x1xf32> to vector<32x128xf32>
    %5 = arith.addf %2, %4 : vector<32x128xf32>
    %cst_5 = arith.constant 0.000000e+00 : f32
    %6 = vector.broadcast %cst_5 : f32 to vector<32x128xf32>
    %7 = arith.maximumf %5, %6 : vector<32x128xf32>
    %c0_6 = arith.constant 0 : index
    %c0_7 = arith.constant 0 : index
    %8 = vector.load %arg4[%c0_6, %c0_7] : memref<32x32xf32, #tpu.memory_space<vmem>>, vector<32x32xf32>
    %cst_8 = arith.constant dense<0.000000e+00> : vector<32x128xf32>
    %9 = tpu.matmul %8, %7, %cst_8 {dimension_numbers = #tpu.dot_dimension_numbers<[1], [0], [0], [1], [0, 0, 1, 1], [], []>} : vector<32x32xf32>, vector<32x128xf32>, vector<32x128xf32> -> vector<32x128xf32>
    %c0_9 = arith.constant 0 : index
    %c0_10 = arith.constant 0 : index
    %10 = vector.load %arg5[%c0_9, %c0_10] : memref<32x1xf32, #tpu.memory_space<vmem>>, vector<32x1xf32>
    %11 = vector.broadcast %10 : vector<32x1xf32> to vector<32x128xf32>
    %12 = arith.addf %9, %11 : vector<32x128xf32>
    %cst_11 = arith.constant 0.000000e+00 : f32
    %13 = vector.broadcast %cst_11 : f32 to vector<32x128xf32>
    %14 = arith.maximumf %12, %13 : vector<32x128xf32>
    %c0_12 = arith.constant 0 : index
    %c0_13 = arith.constant 0 : index
    %15 = vector.load %arg6[%c0_12, %c0_13] : memref<32x1xf32, #tpu.memory_space<vmem>>, vector<32x1xf32>
    %16 = vector.broadcast %15 : vector<32x1xf32> to vector<32x128xf32>
    %17 = arith.mulf %14, %16 : vector<32x128xf32>
    %cst_14 = arith.constant dense<0.000000e+00> : vector<128xf32>
    %18 = vector.multi_reduction <add>, %17, %cst_14 [0] : vector<32x128xf32> to vector<128xf32>
    %19 = vector.shape_cast %18 : vector<128xf32> to vector<1x128xf32>
    %c0_15 = arith.constant 0 : index
    %c0_16 = arith.constant 0 : index
    %20 = memref.load %arg7[%c0_15, %c0_16] : memref<1x1xf32, #tpu.memory_space<smem>>
    %21 = vector.broadcast %20 : f32 to vector<1x128xf32>
    %22 = arith.addf %19, %21 : vector<1x128xf32>
    %c0_17 = arith.constant 0 : index
    %c0_18 = arith.constant 0 : index
    %c0_19 = arith.constant 0 : index
    %23 = vector.load %arg8[%c0_17, %c0_18, %c0_19] : memref<1x1x128xf32, #tpu.memory_space<vmem>>, vector<1x1x128xf32>
    %24 = vector.shape_cast %23 : vector<1x1x128xf32> to vector<1x128xf32>
    %25 = vector.shape_cast %22 : vector<1x128xf32> to vector<1x1x128xf32>
    tpu.vector_store %arg8[%c0_17, %c0_18, %c0_19], %25 {strides = array<i32>} : memref<1x1x128xf32, #tpu.memory_space<vmem>>, vector<1x1x128xf32>,
    return
  }
  func.func @transform_0(%arg0: i32) -> (i32, i32) {
    %c0_i32 = arith.constant 0 : i32
    %c0_i32_0 = arith.constant 0 : i32
    return %arg0, %c0_i32 : i32, i32
  }
  func.func @transform_1(%arg0: i32) -> (i32, i32) {
    %c0_i32 = arith.constant 0 : i32
    %c0_i32_0 = arith.constant 0 : i32
    %c0_i32_1 = arith.constant 0 : i32
    return %c0_i32, %c0_i32_0 : i32, i32
  }
  func.func @transform_2(%arg0: i32) -> (i32, i32) {
    %c0_i32 = arith.constant 0 : i32
    %c0_i32_0 = arith.constant 0 : i32
    %c0_i32_1 = arith.constant 0 : i32
    return %c0_i32, %c0_i32_0 : i32, i32
  }
  func.func @transform_3(%arg0: i32) -> (i32, i32) {
    %c0_i32 = arith.constant 0 : i32
    %c0_i32_0 = arith.constant 0 : i32
    %c0_i32_1 = arith.constant 0 : i32
    return %c0_i32, %c0_i32_0 : i32, i32
  }
  func.func @transform_4(%arg0: i32) -> (i32, i32) {
    %c0_i32 = arith.constant 0 : i32
    %c0_i32_0 = arith.constant 0 : i32
    %c0_i32_1 = arith.constant 0 : i32
    return %c0_i32, %c0_i32_0 : i32, i32
  }
  func.func @transform_5(%arg0: i32) -> (i32, i32) {
    %c0_i32 = arith.constant 0 : i32
    %c0_i32_0 = arith.constant 0 : i32
    %c0_i32_1 = arith.constant 0 : i32
    return %c0_i32, %c0_i32_0 : i32, i32
  }
  func.func @transform_6(%arg0: i32) -> (i32, i32) {
    %c0_i32 = arith.constant 0 : i32
    %c0_i32_0 = arith.constant 0 : i32
    %c0_i32_1 = arith.constant 0 : i32
    return %c0_i32, %c0_i32_0 : i32, i32
  }
  func.func @transform_7(%arg0: i32) -> (i32, i32, i32) {
    %c0_i32 = arith.constant 0 : i32
    %c0_i32_0 = arith.constant 0 : i32
    %c0_i32_1 = arith.constant 0 : i32
    return %arg0, %c0_i32, %c0_i32_0 : i32, i32, i32
  }
}

</mosaic_0001>

<bundles_post_ra>
// kernel: tpu_custom_call.1
= control target key start
LH: loop header
LB: loop body
LE: loop exit
PB: predicated region body
PF: predicated region fallthrough
CT: control target
= control target key end

     0   :  { %vm72_vm0 = vcmask 64512   ;;  %v595_v6 = vmov 0   ;;  %s806_s0 = inlined_call_operand.vmem [shape: f32[16,8], index: 0, kind: input, shape index: {}]   ;;  %s807_s1 = inlined_call_operand.vmem [shape: f32[32,8], index: 1, kind: input, shape index: {}]   ;;  %s808_s2 = inlined_call_operand.vmem [shape: f32[32,1], index: 2, kind: input, shape index: {}]   ;;  %s809_s3 = inlined_call_operand.vmem [shape: f32[32,32], index: 3, kind: input, shape index: {}]   ;;  %s810_s4 = inlined_call_operand.vmem [shape: f32[32,1], index: 4, kind: input, shape index: {}]   ;;  %s811_s5 = inlined_call_operand.vmem [shape: f32[32,1], index: 5, kind: input, shape index: {}]   ;;  %s812_s6 = inlined_call_operand.<no memory space> [shape: f32[1,1], index: 6, kind: input, shape index: {}]   ;;  %s813_s7 = inlined_call_operand.hbm [shape: f32[1,1,128], index: 7, kind: output, shape index: {}]  }
   0x1   :  { %v32_v0 = vld [vmem:[%s806_s0] sm:$0xff]  ;;  %v33_v1 = vld [vmem:[%s806_s0 + $0x8] sm:$0xff]  ;;  %v34_v2 = vld [vmem:[%s806_s0 + $0x10] sm:$0xff]  ;;  %569 = vset.pattern.permute.xlu0 %v595_v6  ;;  %570 = vset.pattern.permute.xlu1 %v595_v6 }
   0x2   :  { %v511_v3 = vpack.c.bf16 %v33_v1, %v32_v0  ;;  %vm648_vm1 = vmpackc.low %vm72_vm0, %vm72_vm0  ;;  %v35_v5 = vld [vmem:[%s806_s0 + $0x18] sm:$0xff]  ;;  %v28_v8 = vld [vmem:[%s807_s1] sm:$0xff] }
   0x3   :  { %v517_v7 = vpack.c.bf16 %v35_v5, %v34_v2  ;;  %v36_v9 = vld [vmem:[%s806_s0 + $0x20] sm:$0xff]  ;;  %v37_v10 = vld [vmem:[%s806_s0 + $0x28] sm:$0xff]  ;;  %491 = vmatprep.mubr.msk.f32.mxu0 %vm72_vm0, %v28_v8  ;;  %v50_v12 = vld [vmem:[%s808_s2 + $0x10] sm:$0xff] }
   0x4   :  { %513 = vmatprep.subr.msk.bf16.mxu0 %vm648_vm1, %v511_v3  ;;  %v48_v11 = vld [vmem:[%s808_s2] sm:$0xff]  ;;  %64 = vperm.xlu1 %570, %v50_v12   ;;  %v523_v13 = vpack.c.bf16 %v37_v10, %v36_v9  ;;  %v49_v14 = vld [vmem:[%s808_s2 + $0x8] sm:$0xff]  ;;  %v51_v15 = vld [vmem:[%s808_s2 + $0x18] sm:$0xff] }
   0x5   :  { %516 = vmatpush3.bf16.xpose.msk.msra.mxu0 %vm648_vm1, %v511_v3  ;;  %54 = vperm.xlu0 %569, %v48_v11  }
   0x6   :  { %519 = vmatprep.subr.msk.bf16.mxu0 %vm648_vm1, %v517_v7 }
   0x7   :  { %13 = vsyncpa [#allocation4], 0  ;;  %v226_v16 = vld [vmem:[%s810_s4] sm:$0xff]  ;;  %v38_v17 = vld [vmem:[%s806_s0 + $0x30] sm:$0xff]  ;;  %vm250_vm2 = vcmask 261120   ;;  %s596_s21 = smov [#allocation3]  }
   0x8   :  { %69 = vperm.xlu1 %570, %v51_v15   ;;  %v39_v18 = vld [vmem:[%s806_s0 + $0x38] sm:$0xff]  ;;  %v227_v19 = vld [vmem:[%s810_s4 + $0x8] sm:$0xff]  ;;  %v228_v21 = vld [vmem:[%s810_s4 + $0x10] sm:$0xff]  ;;  %s399_s22 = sshll.u32 %s596_s21, 4  ;;  %s400_s22 = int_to_ptr.vmem [resolvable:$true] %s399_s22 }
   0x9   :  { %59 = vperm.xlu0 %569, %v49_v14   ;;  %v529_v20 = vpack.c.bf16 %v39_v18, %v38_v17  ;;  %v229_v22 = vld [vmem:[%s810_s4 + $0x18] sm:$0xff]  ;;  %v352_v23 = vld [vmem:[%s811_s5] sm:$0xff]  ;;  %v41_v25 = vld [vmem:[%s806_s0 + $0x48] sm:$0xff]  ;;  %s571_s23 = scalar_lea.vmem %s400_s22, 16  ;;  %s575_s24 = scalar_lea.vmem %s400_s22, 32 }
   0xa   :  { %v40_v24 = vld [vmem:[%s806_s0 + $0x40] sm:$0xff]  ;;  %v353_v26 = vld [vmem:[%s811_s5 + $0x8] sm:$0xff]  ;;  %v354_v28 = vld [vmem:[%s811_s5 + $0x10] sm:$0xff]  ;;  %p572_p0 = scmp.ne.s32.totalorder %s400_s22, %s571_s23  ;;  %p576_p1 = scmp.lt.s32.totalorder %s400_s22, %s400_s22 }
   0xb   :  { %v535_v27 = vpack.c.bf16 %v41_v25, %v40_v24  ;;  %v355_v29 = vld [vmem:[%s811_s5 + $0x18] sm:$0xff]  ;;  %v42_v30 = vld [vmem:[%s806_s0 + $0x50] sm:$0xff]  ;;  %v44_v33 = vld [vmem:[%s806_s0 + $0x60] sm:$0xff]  ;;  %p577_p2 = scmp.lt.s32.totalorder %s575_s24, %s571_s23 }
   0xc   :  { %237 = vperm.xlu1 %570, %v227_v19   ;;  %v43_v31 = vld [vmem:[%s806_s0 + $0x58] sm:$0xff]  ;;  %v45_v34 = vld [vmem:[%s806_s0 + $0x68] sm:$0xff]  ;;  %v46_v36 = vld [vmem:[%s806_s0 + $0x70] sm:$0xff] }
   0xd   :  { %522 = vmatpush3.bf16.xpose.msk.msra.mxu0 %vm648_vm1, %v517_v7  ;;  %232 = vperm.xlu0 %569, %v226_v16   ;;  %v541_v32 = vpack.c.bf16 %v43_v31, %v42_v30  ;;  %v547_v35 = vpack.c.bf16 %v45_v34, %v44_v33  ;;  %v47_v37 = vld [vmem:[%s806_s0 + $0x78] sm:$0xff]  ;;  %v29_v39 = vld [vmem:[%s807_s1 + $0x8] sm:$0xff]  ;;  %v30_v40 = vld [vmem:[%s807_s1 + $0x10] sm:$0xff]  ;;  %p578_p3 = por %p577_p2, %p576_p1 }
   0xe   :  { %525 = vmatprep.subr.msk.bf16.mxu0 %vm648_vm1, %v523_v13  ;;  %v553_v38 = vpack.c.bf16 %v47_v37, %v46_v36  ;;  %v31_v41 = vld [vmem:[%s807_s1 + $0x18] sm:$0xff]  ;;  %v222_v42 = vld [vmem:[%s809_s3] sm:$0xff]  ;;  %v223_v61 = vld [vmem:[%s809_s3 + $0x8] sm:$0xff] }
   0xf   :  { %505 = vmatprep.mubr.msk.f32.mxu1 %vm250_vm2, %v222_v42  ;;  %v224_v62 = vld [vmem:[%s809_s3 + $0x10] sm:$0xff]  ;;  %v225_v63 = vld [vmem:[%s809_s3 + $0x18] sm:$0xff]  ;;  %p579_p4 = pnand %p578_p3, %p572_p0 }
  0x10   :  { %247 = vperm.xlu1 %570, %v229_v22  }
  0x11   :  { %242 = vperm.xlu0 %569, %v228_v21  }
  0x14   :  { %363 = vperm.xlu1 %570, %v353_v26  }
  0x15   :  { %528 = vmatpush3.bf16.xpose.msk.msra.mxu0 %vm648_vm1, %v523_v13  ;;  %358 = vperm.xlu0 %569, %v352_v23  }
  0x16   :  { %531 = vmatprep.subr.msk.bf16.mxu0 %vm648_vm1, %v529_v20 }
  0x18   :  { %373 = vperm.xlu1 %570, %v355_v29  }
  0x19   :  { %368 = vperm.xlu0 %569, %v354_v28  }
  0x1d   :  { %534 = vmatpush3.bf16.xpose.msk.msra.mxu0 %vm648_vm1, %v529_v20 }
  0x1e   :  { %537 = vmatprep.subr.msk.bf16.mxu0 %vm648_vm1, %v535_v27 }
  0x25   :  { %540 = vmatpush3.bf16.xpose.msk.msra.mxu0 %vm648_vm1, %v535_v27 }
  0x26   :  { %543 = vmatprep.subr.msk.bf16.mxu0 %vm648_vm1, %v541_v32 }
  0x2d   :  { %546 = vmatpush3.bf16.xpose.msk.msra.mxu0 %vm648_vm1, %v541_v32  ;;  %v390_v32 = vstv %s812_s6 }
  0x2e   :  { %549 = vmatprep.subr.msk.bf16.mxu0 %vm648_vm1, %v547_v35 }
  0x35   :  { %552 = vmatpush3.bf16.xpose.msk.msra.mxu0 %vm648_vm1, %v547_v35 }
  0x36   :  { %555 = vmatprep.subr.msk.bf16.mxu0 %vm648_vm1, %v553_v38 }
  0x3d   :  { %558 = vmatpush3.bf16.xpose.msk.msra.mxu0 %vm648_vm1, %v553_v38 }
  0x44   :  { %492 = vmatmul.mubr.msk.f32.vlgmr.msra.gmra.mrb[0].mxu0 %vm72_vm0, %v29_v39 }
  0x45   :  { %494 = vmatprep.mubr.msk.f32.mxu0 %vm72_vm0, %v30_v40 }
  0x48   :  { %495 = vmatmul.mubr.msk.f32.gmra.mrb[2].mxu0 %vm72_vm0, %v31_v41 }
  0x83   :  { %v65_v44 = vpop.permute.xlu1 %64 }
  0x84   :  { %v55_v43 = vpop.permute.xlu0 %54 }
  0x87   :  { %v70_v51 = vpop.permute.xlu1 %69 }
  0x88   :  { %v60_v45 = vpop.permute.xlu0 %59 }
  0x8b   :  { %v238_v1 = vpop.permute.xlu1 %237 }
  0x8c   :  { %v233_v0 = vpop.permute.xlu0 %232 }
  0x8f   :  { %v248_v3 = vpop.permute.xlu1 %247 }
  0x90   :  { %v243_v2 = vpop.permute.xlu0 %242 }
  0x93   :  { %v364_v10 = vpop.permute.xlu1 %363 }
  0x94   :  { %v359_v8 = vpop.permute.xlu0 %358 }
  0x97   :  { %v374_v23 = vpop.permute.xlu1 %373 }
  0x98   :  { %v369_v21 = vpop.permute.xlu0 %368 }
 0x117   :  { %v493_v46 = vpop.f32.mrb[0].mxu0 }
 0x118   :  { %v205_v47 = vadd.f32 %v493_v46, %v60_v45  ;;  %v199_v48 = vpop.f32.mrb[1].mxu0 }
 0x119   :  { %v200_v49 = vadd.f32 %v199_v48, %v55_v43 }
 0x11a   :  { %v219_v50 = vmax.f32 %v205_v47, 0.0 }
 0x11b   :  { %v218_v52 = vmax.f32 %v200_v49, 0.0  ;;  %v496_v53 = vpop.f32.mrb[2].mxu0 }
 0x11c   :  { %v215_v54 = vadd.f32 %v496_v53, %v70_v51  ;;  %v209_v55 = vpop.f32.mrb[3].mxu0 }
 0x11d   :  { %v210_v56 = vadd.f32 %v209_v55, %v65_v44  ;;  %v559_v57 = vpack.c.bf16 %v219_v50, %v218_v52 }
 0x11e   :  { %v221_v58 = vmax.f32 %v215_v54, 0.0 }
 0x11f   :  { %v220_v59 = vmax.f32 %v210_v56, 0.0  ;;  %560 = vmatprep.subr.bf16.mxu1 %v559_v57 }
 0x120   :  { %562 = vmatpush3.bf16.msra.mxu1 %v559_v57 }
 0x121   :  { %v563_v60 = vpack.c.bf16 %v221_v58, %v220_v59 }
 0x123   :  { %564 = vmatprep.subr.bf16.mxu1 %v563_v60 }
 0x124   :  { %566 = vmatpush3.bf16.msra.mxu1 %v563_v60 }
 0x127   :  { %506 = vmatmul.mubr.msk.f32.vlgmr.msra.gmra.mrb[0].mxu1 %vm250_vm2, %v223_v61 }
 0x128   :  { %508 = vmatprep.mubr.msk.f32.mxu1 %vm250_vm2, %v224_v62 }
 0x12b   :  { %509 = vmatmul.mubr.msk.f32.gmra.mrb[2].mxu1 %vm250_vm2, %v225_v63 }
 0x1fa   :  { %v507_v4 = vpop.f32.mrb[0].mxu1 }
 0x1fb   :  { %v335_v5 = vadd.f32 %v507_v4, %v238_v1  ;;  %v329_v6 = vpop.f32.mrb[1].mxu1 }
 0x1fc   :  { %v330_v7 = vadd.f32 %v329_v6, %v233_v0 }
 0x1fd   :  { %v349_v9 = vmax.f32 %v335_v5, 0.0 }
 0x1fe   :  { %v348_v11 = vmax.f32 %v330_v7, 0.0  ;;  %v510_v12 = vpop.f32.mrb[2].mxu1 }
 0x1ff   :  { %v377_v13 = vmul.f32 %v364_v10, %v349_v9  ;;  %v345_v14 = vadd.f32 %v510_v12, %v248_v3  ;;  %v339_v15 = vpop.f32.mrb[3].mxu1 }
 0x200   :  { %v376_v16 = vmul.f32 %v359_v8, %v348_v11  ;;  %v340_v17 = vadd.f32 %v339_v15, %v243_v2 }
 0x201   :  { %v351_v19 = vmax.f32 %v345_v14, 0.0 }
 0x202   :  { %v380_v18 = vadd.f32 %v377_v13, %v376_v16  ;;  %v350_v20 = vmax.f32 %v340_v17, 0.0 }
 0x203   :  { %v379_v24 = vmul.f32 %v374_v23, %v351_v19 }
 0x204   :  { %v378_v22 = vmul.f32 %v369_v21, %v350_v20 }
 0x206   :  { %v381_v25 = vadd.f32 %v380_v18, %v378_v22 }
 0x208   :  { %v382_v26 = vadd.f32 %v381_v25, %v379_v24 }
 0x20a   :  { %v383_v27 = vrot.slane %v382_v26, 4 }
 0x20c   :  { %v384_v28 = vadd.f32 %v383_v27, %v382_v26 }
 0x20e   :  { %v385_v29 = vrot.slane %v384_v28, 2 }
 0x210   :  { %v386_v30 = vadd.f32 %v385_v29, %v384_v28 }
 0x212   :  { %v387_v31 = vrot.slane %v386_v30, 1 }
 0x214   :  { %v388_v33 = vadd.f32 %v387_v31, %v386_v30 }
 0x216   :  { %v391_v34 = vadd.f32 %v390_v32, %v388_v33 }
 0x218   :  { %392 = vst [vmem:[#allocation3] sm:$0x1] %v391_v34 }
 0x219   :  { %582 = shalt.err (!%p579_p4)
}
 0x21a   :  { %s583_s26 = scalar_lea.hbm %s813_s7, 16 }
 0x21b   :  { %p584_p5 = scmp.ne.s32.totalorder %s813_s7, %s583_s26  ;;  %p587_p6 = scmp.lt.u32.totalorder %s583_s26, %s813_s7 }
 0x21d   :  { %p589_p7 = pnand %p587_p6, %p584_p5 }
 0x21f   :  { %592 = shalt.err (!%p589_p7)
}
 0x220   :  { %402 = dma.vmem_to_hbm [thread:$0]  %s400_s22, 16, %s813_s7, [#allocation4]  }
 0x221   :  { %593 = dma.done.wait [#allocation4], 16  }
 0x222   :  { %594 = vsyncadd [#allocation4], 4294967280 }
 0x223   :  { %406 = vsyncpa [#allocation4], 1 }

</bundles_post_ra>
